<compile_context>
chip_gen: v5e
topology: v5e:2x2
jax: 0.10.0
libtpu: 0.0.40
codegen_flags: <defaults>
</compile_context>

<pallas_src>
import jax
import jax.numpy as jnp
from jax.experimental import pallas as pl
from jax.experimental.pallas import tpu as pltpu


def additive_attention_kernel(q_ref, k_ref, v_ref, wq_ref, wk_ref, ws_ref,
                              bias_ref, ctx_ref, attn_ref):
    tb, t, d = v_ref.shape
    mm_dtype = k_ref.dtype                                  # matmul operand dtype (bf16/f32)

    q = q_ref[...]                                          # (TB, D) f32
    v = v_ref[...]                                          # (TB, T, D) mm_dtype
    k_flat = k_ref[...]                                     # (TB*T, D) mm_dtype (pre-flattened)

    # Projections on the MXU: one big (TB*T, D) x (D, D) for the key, f32 accumulate.
    kp = jnp.dot(k_flat, wk_ref[...], preferred_element_type=jnp.float32)   # (TB*T, D)
    qp = jnp.dot(q.astype(mm_dtype), wq_ref[...],
                 preferred_element_type=jnp.float32)                        # (TB, D)
    qpb = qp + bias_ref[...]                                # fold additive bias in once (TB, D)

    # tanh(key_proj + query_proj + bias) in f32 on the VPU/EUP (v5e has no bf16 VPU/EUP).
    # T is a multiple of 8 here, so this reshape is tile-aligned (layout-preserving);
    # it remains correct (just a relayout) for other T.
    h = jnp.tanh(kp.reshape(tb, t, d) + qpb[:, None, :])    # (TB, T, D)

    # score_proj: VPU multiply + lane reduction over D.  Keeps T on the lane axis so
    # the softmax uses lane reductions and the (TB, T) attn store needs no transpose.
    # score_proj.bias is softmax-invariant -> removed (outputs unchanged).
    score = jnp.sum(h * ws_ref[...], axis=-1)               # (TB, T) f32

    # Max-stabilised softmax over T; reciprocal on the EUP (separate issue slot).
    m = jnp.max(score, axis=-1, keepdims=True)              # (TB, 1)
    e = jnp.exp(score - m)                                  # (TB, T)
    attn = e * pl.reciprocal(jnp.sum(e, axis=-1, keepdims=True), approx=True)

    # context = attn @ value (contract over T on the MXU; layout-natural, see header),
    # then the residual query add in f32.
    ctx = jnp.einsum('bqt,btd->bqd', attn[:, None, :].astype(mm_dtype), v,
                     preferred_element_type=jnp.float32)[:, 0, :]            # (TB, D)

    ctx_ref[...] = (ctx + q).astype(ctx_ref.dtype)
    attn_ref[...] = attn.astype(attn_ref.dtype)


def additive_attention(query, key, value, wq, wk, ws, wsb, bias, *,
                       tb=128, matmul_dtype=jnp.bfloat16):
    """query: (B,1,D), key/value: (B,T,D). Returns context (B,1,D), attn (B,T).

    `wsb` (score_proj.bias) is accepted for API parity but never used: adding a
    constant to the pre-softmax score cannot change attn or context.
    """
    B, _, D = query.shape
    T = key.shape[1]

    # ---- batch tile selection -------------------------------------------------
    tb = max(1, min(tb, B))
    if tb < B:
        tb = max(8, (tb // 8) * 8)                 # multiple-of-8 sublane tiles
    # Prefer >= 2 grid steps so the "parallel" batch axis can shard across both
    # TensorCores on megacore parts (v7x).
    if tb >= B and B >= 16:
        tb = max(8, (pl.cdiv(B, 2) // 8) * 8)

    # Shrink tb (in steps of 8) until the double-buffered working set fits a
    # conservative 12 MiB budget -> safe under every generation's scoped-VMEM
    # default (v5e 16 MiB, v6e 32 MiB, v7x 32 MiB of 64 MiB physical per TC).
    mm_bytes = jnp.dtype(matmul_dtype).itemsize

    def _step_bytes(t_b):
        tiles = (2 * t_b * T * D * mm_bytes        # key + value blocks
                 + t_b * D * 4                     # query block (f32)
                 + t_b * D * 4 + t_b * T * 4)      # ctx + attn output blocks (f32)
        return 2 * tiles + 2 * D * D * mm_bytes + 2 * D * 4   # x2 double-buffer + resident weights

    while tb > 8 and tb % 8 == 0 and _step_bytes(tb) > 12 * 1024 * 1024:
        tb -= 8

    Bp = pl.cdiv(B, tb) * tb

    # ---- wrapper-side layout / dtype plumbing ----------------------------------
    q2 = query.reshape(B, D)
    if Bp != B:
        pad = Bp - B
        q2 = jnp.pad(q2, ((0, pad), (0, 0)))
        key = jnp.pad(key, ((0, pad), (0, 0), (0, 0)))
        value = jnp.pad(value, ((0, pad), (0, 0), (0, 0)))

    # PyTorch Linear computes x @ W.T: pre-transpose once here.
    wq_t = wq.T.astype(matmul_dtype)                   # (D, D) MXU operand
    wk_t = wk.T.astype(matmul_dtype)                   # (D, D) MXU operand
    ws_row = ws.reshape(1, D).astype(jnp.float32)      # score weights (f32 VPU path)
    bias2 = bias.reshape(1, D).astype(jnp.float32)     # additive bias (f32)

    key_flat = key.reshape(Bp * T, D).astype(matmul_dtype)   # pre-flattened key slab
    value_c = value.astype(matmul_dtype)

    ctx, attn = pl.pallas_call(
        additive_attention_kernel,
        out_shape=(
            jax.ShapeDtypeStruct((Bp, D), query.dtype),
            jax.ShapeDtypeStruct((Bp, T), query.dtype),
        ),
        grid_spec=pltpu.PrefetchScalarGridSpec(
            num_scalar_prefetch=0,
            grid=(Bp // tb,),
            in_specs=[
                pl.BlockSpec((tb, D), lambda b: (b, 0)),          # query (f32)
                pl.BlockSpec((tb * T, D), lambda b: (b, 0)),      # key, flat (matmul dtype)
                pl.BlockSpec((tb, T, D), lambda b: (b, 0, 0)),    # value     (matmul dtype)
                pl.BlockSpec((D, D), lambda b: (0, 0)),           # Wq^T (resident)
                pl.BlockSpec((D, D), lambda b: (0, 0)),           # Wk^T (resident)
                pl.BlockSpec((1, D), lambda b: (0, 0)),           # Ws row (resident, f32)
                pl.BlockSpec((1, D), lambda b: (0, 0)),           # additive bias (resident, f32)
            ],
            out_specs=[
                pl.BlockSpec((tb, D), lambda b: (b, 0)),          # context (Bp, D)
                pl.BlockSpec((tb, T), lambda b: (b, 0)),          # attn    (Bp, T)
            ],
        ),
        compiler_params=pltpu.CompilerParams(
            dimension_semantics=("parallel",)),
    )(q2, key_flat, value_c, wq_t, wk_t, ws_row, bias2)

    return ctx[:B].reshape(B, 1, D), attn[:B]


def reference(query, key, value, wq, wk, ws, wsb, bias):
    """Plain-JAX f32 reference matching the PyTorch forward semantics."""
    score = jnp.squeeze(
        jnp.tanh(key @ wk.T + query @ wq.T + bias) @ ws.T + wsb, -1)   # (B, T)
    attn = jax.nn.softmax(score, axis=-1)                              # (B, T)
    context = jnp.einsum("bt,btd->bd", attn, value)[:, None, :] + query
    return context, attn


if __name__ == "__main__":
    B, T, D = 16, 8, 32
    key0 = jax.random.PRNGKey(0)
    kq, kk, kv, kwq, kwk, kws, kwsb, kb = jax.random.split(key0, 8)

    query = jax.random.normal(kq, (B, 1, D), dtype=jnp.float32)
    key_t = jax.random.normal(kk, (B, T, D), dtype=jnp.float32)
    value = jax.random.normal(kv, (B, T, D), dtype=jnp.float32)

    # Deterministic synthetic parameters (shapes per module __init__).
    wq = jax.random.uniform(kwq, (D, D), minval=-0.1, maxval=0.1)   # query_proj.weight
    wk = jax.random.uniform(kwk, (D, D), minval=-0.1, maxval=0.1)   # key_proj.weight
    ws = jax.random.uniform(kws, (1, D), minval=-0.1, maxval=0.1)   # score_proj.weight
    wsb = jax.random.uniform(kwsb, (1,), minval=-0.1, maxval=0.1)   # score_proj.bias
    bias = jax.random.uniform(kb, (D,), minval=-0.1, maxval=0.1)    # self.bias

    ctx_ref, attn_ref = reference(query, key_t, value, wq, wk, ws, wsb, bias)

    # Exact f32 MXU path: tight check (tolerance covers the EUP approx reciprocal).
    ctx32, attn32 = additive_attention(query, key_t, value, wq, wk, ws, wsb, bias,
                                       matmul_dtype=jnp.float32)
    jax.block_until_ready((ctx32, attn32))
    assert jnp.allclose(ctx32, ctx_ref, atol=2e-3, rtol=2e-3), "context mismatch (f32)"
    assert jnp.allclose(attn32, attn_ref, atol=2e-3, rtol=2e-3), "attn mismatch (f32)"

    # Default bf16 fast path (bf16 DMA + MXU operands, f32 accumulate/softmax):
    # looser tolerance for the bf16 matmul inputs.
    ctx16, attn16 = additive_attention(query, key_t, value, wq, wk, ws, wsb, bias)
    jax.block_until_ready((ctx16, attn16))
    assert jnp.allclose(ctx16, ctx_ref, atol=3e-2, rtol=3e-2), "context mismatch (bf16)"
    assert jnp.allclose(attn16, attn_ref, atol=3e-2, rtol=3e-2), "attn mismatch (bf16)"

    print("KERNEL_OK")
</pallas_src>

<mosaic_0001>
module attributes {stable_mosaic.version = 11 : i64} {
  func.func @additive_attention_kernel(%arg0: i32, %arg1: memref<8x32xf32, #tpu.memory_space<vmem>>, %arg2: memref<64x32xf32, #tpu.memory_space<vmem>>, %arg3: memref<8x8x32xf32, #tpu.memory_space<vmem>>, %arg4: memref<32x32xf32, #tpu.memory_space<vmem>>, %arg5: memref<32x32xf32, #tpu.memory_space<vmem>>, %arg6: memref<1x32xf32, #tpu.memory_space<vmem>>, %arg7: memref<1x32xf32, #tpu.memory_space<vmem>>, %arg8: memref<8x32xf32, #tpu.memory_space<vmem>>, %arg9: memref<8x8xf32, #tpu.memory_space<vmem>>) attributes {dimension_semantics = [#tpu.dimension_semantics<parallel>], iteration_bounds = array<i64: 2>, scalar_prefetch = 0 : i64, scratch_operands = 0 : i64, tpu.core_type = #tpu.core_type<tc>, window_params = [{transform_indices = @transform_0, window_bounds = array<i64: 8, 32>}, {transform_indices = @transform_1, window_bounds = array<i64: 64, 32>}, {transform_indices = @transform_2, window_bounds = array<i64: 8, 8, 32>}, {pipeline_mode = #tpu.pipeline_mode<synchronous>, transform_indices = @transform_3, window_bounds = array<i64: 32, 32>}, {pipeline_mode = #tpu.pipeline_mode<synchronous>, transform_indices = @transform_4, window_bounds = array<i64: 32, 32>}, {pipeline_mode = #tpu.pipeline_mode<synchronous>, transform_indices = @transform_5, window_bounds = array<i64: 1, 32>}, {pipeline_mode = #tpu.pipeline_mode<synchronous>, transform_indices = @transform_6, window_bounds = array<i64: 1, 32>}, {transform_indices = @transform_7, window_bounds = array<i64: 8, 32>}, {transform_indices = @transform_8, window_bounds = array<i64: 8, 8>}]} {
    %c0 = arith.constant 0 : index
    %c0_0 = arith.constant 0 : index
    %0 = vector.load %arg1[%c0, %c0_0] : memref<8x32xf32, #tpu.memory_space<vmem>>, vector<8x32xf32>
    %c0_1 = arith.constant 0 : index
    %c0_2 = arith.constant 0 : index
    %c0_3 = arith.constant 0 : index
    %1 = vector.load %arg3[%c0_1, %c0_2, %c0_3] : memref<8x8x32xf32, #tpu.memory_space<vmem>>, vector<8x8x32xf32>
    %c0_4 = arith.constant 0 : index
    %c0_5 = arith.constant 0 : index
    %2 = vector.load %arg2[%c0_4, %c0_5] : memref<64x32xf32, #tpu.memory_space<vmem>>, vector<64x32xf32>
    %c0_6 = arith.constant 0 : index
    %c0_7 = arith.constant 0 : index
    %3 = vector.load %arg5[%c0_6, %c0_7] : memref<32x32xf32, #tpu.memory_space<vmem>>, vector<32x32xf32>
    %cst = arith.constant dense<0.000000e+00> : vector<64x32xf32>
    %4 = tpu.matmul %2, %3, %cst {dimension_numbers = #tpu.dot_dimension_numbers<[1], [0], [0], [1], [0, 0, 1, 1], [], []>} : vector<64x32xf32>, vector<32x32xf32>, vector<64x32xf32> -> vector<64x32xf32>
    %c0_8 = arith.constant 0 : index
    %c0_9 = arith.constant 0 : index
    %5 = vector.load %arg4[%c0_8, %c0_9] : memref<32x32xf32, #tpu.memory_space<vmem>>, vector<32x32xf32>
    %cst_10 = arith.constant dense<0.000000e+00> : vector<8x32xf32>
    %6 = tpu.matmul %0, %5, %cst_10 {dimension_numbers = #tpu.dot_dimension_numbers<[1], [0], [0], [1], [0, 0, 1, 1], [], []>} : vector<8x32xf32>, vector<32x32xf32>, vector<8x32xf32> -> vector<8x32xf32>
    %c0_11 = arith.constant 0 : index
    %c0_12 = arith.constant 0 : index
    %7 = vector.load %arg7[%c0_11, %c0_12] : memref<1x32xf32, #tpu.memory_space<vmem>>, vector<1x32xf32>
    %8 = vector.broadcast %7 : vector<1x32xf32> to vector<8x32xf32>
    %9 = arith.addf %6, %8 : vector<8x32xf32>
    %10 = vector.shape_cast %4 : vector<64x32xf32> to vector<8x8x32xf32>
    %11 = vector.shape_cast %9 : vector<8x32xf32> to vector<8x1x32xf32>
    %12 = vector.broadcast %11 : vector<8x1x32xf32> to vector<8x8x32xf32>
    %13 = arith.addf %10, %12 : vector<8x8x32xf32>
    %14 = math.tanh %13 : vector<8x8x32xf32>
    %c0_13 = arith.constant 0 : index
    %c0_14 = arith.constant 0 : index
    %15 = vector.load %arg6[%c0_13, %c0_14] : memref<1x32xf32, #tpu.memory_space<vmem>>, vector<1x32xf32>
    %16 = vector.shape_cast %15 : vector<1x32xf32> to vector<1x1x32xf32>
    %17 = vector.broadcast %16 : vector<1x1x32xf32> to vector<8x8x32xf32>
    %18 = arith.mulf %14, %17 : vector<8x8x32xf32>
    %cst_15 = arith.constant dense<0.000000e+00> : vector<8x8xf32>
    %19 = vector.multi_reduction <add>, %18, %cst_15 [2] : vector<8x8x32xf32> to vector<8x8xf32>
    %cst_16 = arith.constant dense<0xFF800000> : vector<8xf32>
    %20 = vector.multi_reduction <maximumf>, %19, %cst_16 [1] : vector<8x8xf32> to vector<8xf32>
    %21 = vector.shape_cast %20 : vector<8xf32> to vector<8x1xf32>
    %22 = vector.broadcast %21 : vector<8x1xf32> to vector<8x8xf32>
    %23 = arith.subf %19, %22 : vector<8x8xf32>
    %24 = math.exp %23 : vector<8x8xf32>
    %cst_17 = arith.constant dense<0.000000e+00> : vector<8xf32>
    %25 = vector.multi_reduction <add>, %24, %cst_17 [1] : vector<8x8xf32> to vector<8xf32>
    %26 = vector.shape_cast %25 : vector<8xf32> to vector<8x1xf32>
    %27 = tpu.reciprocal %26 {approx = true} : vector<8x1xf32> -> vector<8x1xf32>
    %28 = vector.broadcast %27 : vector<8x1xf32> to vector<8x8xf32>
    %29 = arith.mulf %24, %28 : vector<8x8xf32>
    %30 = vector.shape_cast %29 : vector<8x8xf32> to vector<8x1x8xf32>
    "tpu.trace_start"() <{level = 10 : i32, message = "bqt,btd->bqd"}> : () -> ()
    %cst_18 = arith.constant dense<0.000000e+00> : vector<8x1x32xf32>
    %31 = tpu.matmul %30, %1, %cst_18 {dimension_numbers = #tpu.dot_dimension_numbers<[2], [1], [1], [2], [0, 0, 0, 1, 1, 2], [0], [0]>} : vector<8x1x8xf32>, vector<8x8x32xf32>, vector<8x1x32xf32> -> vector<8x1x32xf32>
    "tpu.trace_stop"() : () -> ()
    %32 = vector.shape_cast %31 : vector<8x1x32xf32> to vector<8x32xf32>
    %33 = arith.addf %32, %0 : vector<8x32xf32>
    %c0_19 = arith.constant 0 : index
    %c0_20 = arith.constant 0 : index
    %34 = vector.load %arg8[%c0_19, %c0_20] : memref<8x32xf32, #tpu.memory_space<vmem>>, vector<8x32xf32>
    tpu.vector_store %arg8[%c0_19, %c0_20], %33 {strides = array<i32>} : memref<8x32xf32, #tpu.memory_space<vmem>>, vector<8x32xf32>,
    %c0_21 = arith.constant 0 : index
    %c0_22 = arith.constant 0 : index
    %35 = vector.load %arg9[%c0_21, %c0_22] : memref<8x8xf32, #tpu.memory_space<vmem>>, vector<8x8xf32>
    tpu.vector_store %arg9[%c0_21, %c0_22], %29 {strides = array<i32>} : memref<8x8xf32, #tpu.memory_space<vmem>>, vector<8x8xf32>,
    return
  }
  func.func @transform_0(%arg0: i32) -> (i32, i32) {
    %c0_i32 = arith.constant 0 : i32
    %c0_i32_0 = arith.constant 0 : i32
    return %arg0, %c0_i32 : i32, i32
  }
  func.func @transform_1(%arg0: i32) -> (i32, i32) {
    %c0_i32 = arith.constant 0 : i32
    %c0_i32_0 = arith.constant 0 : i32
    return %arg0, %c0_i32 : i32, i32
  }
  func.func @transform_2(%arg0: i32) -> (i32, i32, i32) {
    %c0_i32 = arith.constant 0 : i32
    %c0_i32_0 = arith.constant 0 : i32
    %c0_i32_1 = arith.constant 0 : i32
    return %arg0, %c0_i32, %c0_i32_0 : i32, i32, i32
  }
  func.func @transform_3(%arg0: i32) -> (i32, i32) {
    %c0_i32 = arith.constant 0 : i32
    %c0_i32_0 = arith.constant 0 : i32
    %c0_i32_1 = arith.constant 0 : i32
    return %c0_i32, %c0_i32_0 : i32, i32
  }
  func.func @transform_4(%arg0: i32) -> (i32, i32) {
    %c0_i32 = arith.constant 0 : i32
    %c0_i32_0 = arith.constant 0 : i32
    %c0_i32_1 = arith.constant 0 : i32
    return %c0_i32, %c0_i32_0 : i32, i32
  }
  func.func @transform_5(%arg0: i32) -> (i32, i32) {
    %c0_i32 = arith.constant 0 : i32
    %c0_i32_0 = arith.constant 0 : i32
    %c0_i32_1 = arith.constant 0 : i32
    return %c0_i32, %c0_i32_0 : i32, i32
  }
  func.func @transform_6(%arg0: i32) -> (i32, i32) {
    %c0_i32 = arith.constant 0 : i32
    %c0_i32_0 = arith.constant 0 : i32
    %c0_i32_1 = arith.constant 0 : i32
    return %c0_i32, %c0_i32_0 : i32, i32
  }
  func.func @transform_7(%arg0: i32) -> (i32, i32) {
    %c0_i32 = arith.constant 0 : i32
    %c0_i32_0 = arith.constant 0 : i32
    return %arg0, %c0_i32 : i32, i32
  }
  func.func @transform_8(%arg0: i32) -> (i32, i32) {
    %c0_i32 = arith.constant 0 : i32
    %c0_i32_0 = arith.constant 0 : i32
    return %arg0, %c0_i32 : i32, i32
  }
}

</mosaic_0001>

<bundles_post_ra>
// kernel: tpu_custom_call.1
= control target key start
LH: loop header
LB: loop body
LE: loop exit
PB: predicated region body
PF: predicated region fallthrough
CT: control target
= control target key end

     0   :  { %s1797_s0 = inlined_call_operand.hbm [shape: f32[16,32], index: 0, kind: input, shape index: {}]   ;;  %s1798_s1 = inlined_call_operand.vmem [shape: f32[128,32], index: 1, kind: input, shape index: {}]   ;;  %s1799_s2 = inlined_call_operand.vmem [shape: f32[16,8,32], index: 2, kind: input, shape index: {}]   ;;  %s1800_s3 = inlined_call_operand.vmem [shape: f32[32,32], index: 3, kind: input, shape index: {}]   ;;  %s1801_s4 = inlined_call_operand.hbm [shape: f32[32,32], index: 4, kind: input, shape index: {}]   ;;  %s1802_s5 = inlined_call_operand.vmem [shape: f32[1,32], index: 5, kind: input, shape index: {}]   ;;  %s1803_s6 = inlined_call_operand.vmem [shape: f32[1,32], index: 6, kind: input, shape index: {}]   ;;  %s1804_s7 = inlined_call_operand.hbm [shape: f32[16,32], index: 7, kind: output, shape index: {0}]   ;;  %s1805_s8 = inlined_call_operand.vmem [shape: f32[16,8], index: 8, kind: output, shape index: {1}]  }
   0x1   :  { %1806 = sst [smem:[#allocation12_spill]] %s1801_s4 }
   0x2   :  { %14 = vsyncpa [#allocation3], 0 }
   0x3   :  { %16 = vsyncpa [#allocation3 + $0x1], 0 }
   0x4   :  { %17 = vsyncpa [#allocation6], 0 }
   0x5   :  { %18 = vsyncpa [#allocation4], 0 }
   0x6   :  { %20 = vsyncpa [#allocation4 + $0x1], 0  ;;  %s1495_s27 = smov 0   ;;  %s1497_s28 = smov 0  }
   0x7   :  { %s1499_s29 = smov 0   ;;  %s1501_s30 = smov 0  }
   0x8 LB: > { %s1807_s4 = sld [smem:[#allocation12_spill]]  ;;  %s1519_s12 = sadd.s32 4294967295, %s1444_s30   ;;  %s1444_s30 = sphi %s1501_s30, %s1819_s30   ;;  %s1440_s29 = sphi %s1499_s29, %s1818_s29   ;;  %s1436_s28 = sphi %s1497_s28, %s1817_s28   ;;  %s1432_s27 = sphi %s1495_s27, %s1816_s27  }
   0x9   : > { %p1168_p0 = scmp.ge.s32.totalorder %s1444_s30, 1  ;;  %p47_p1 = scmp.eq.s32.totalorder %s1519_s12, 0 }
   0xa   : > { %p245_p2 = scmp.lt.s32.totalorder %s1444_s30, 3  ;;  %s1446_s14 = smov [#allocation5]  }
   0xb   : > { %s261_s15 = sshll.u32 %s1446_s14, 4  ;;  %s1447_s16 = smov 128   ;;  %s262_s15 = int_to_ptr.vmem [resolvable:$true] %s261_s15 }
   0xc   : > { %p1524_p3 = pnand %p1168_p0, %p245_p2  ;;  %s1448_s17 = smov 8  }
   0xd   : > { %s1167_s18 = sadd.s32 4294967294, %s1444_s30   ;;  %s1535_s19 = sadd.s32 1, %s1444_s30  }
   0xe   : > { %s259_s11 = sshll.u32 %s1807_s4, 4  ;;  %p1223_p4 = pneg %p1524_p3  ;;  %s260_s11 = int_to_ptr.hbm [resolvable:$true] %s259_s11 }
   0xf   : > { %s33_s20 = sadd.s32 1, %s1440_s29  ;;  %s30_s21 = ssub.s32 %s1444_s30, %s1535_s19 }
  0x10   : > { %p1224_p6 = pnand %p1223_p4, %p47_p1  ;;  %p40_p7 = scmp.ne.s32.totalorder %s1440_s29, %s1436_s28 }
  0x11   : > { %p31_p8 = scmp.eq.s32.totalorder %s30_s21, 0  ;;  %p41_p9 = scmp.eq.s32.totalorder %s1444_s30, 0 }
  0x12   : > { %1226 = dma.hbm_to_vmem [thread:$0]  (!%p1224_p6), %s260_s11, 512, %s262_s15, [#allocation6], %s1447_s16, %s1447_s16, %s1448_s17  }
  0x13   : > { %p46_p10 = scmp.ne.s32.totalorder %s1436_s28, %s1432_s27  ;;  %p206_p11 = scmp.eq.s32.totalorder %s1519_s12, 1 }
  0x14   : > { %s1547_s22 = scalar_select %p31_p8, %s1440_s29, %s33_s20  }
  0x15   : > { %p1551_p12 = por %p47_p1, %p46_p10  ;;  %p1555_p13 = por %p206_p11, %p40_p7 }
  0x16   : > { %1809 = sst [smem:[#allocation11_spill]] %s1547_s22  ;;  %p212_p0 = scmp.eq.s32.totalorder %s1167_s18, 1 }
  0x17   : > { %p42_p2 = por %p41_p9, %p40_p7  ;;  %s281_s25 = sand.u32 1, %s1440_s29  }
  0x18   : > { %p1560_p4 = por %p212_p0, %p46_p10  ;;  %p1236_p6 = scmp.lt.s32.totalorder %s1444_s30, 2 }
  0x19   : > { %s1171_s9 = sshll.u32 %s281_s25, 3  ;;  %s1172_s10 = sshll.u32 %s1444_s30, 3 }
  0x1a   : > { %s289_s15 = scalar_lea.hbm %s1797_s0, %s1172_s10  ;;  %s285_s17 = scalar_lea.vmem [#allocation2], %s1171_s9 }
  0x1b   : > { %s291_s16 = sshll.u32 %s289_s15, 4  ;;  %s293_s20 = sshll.u32 %s285_s17, 4  ;;  %s292_s16 = int_to_ptr.hbm [resolvable:$true] %s291_s16  ;;  %s294_s20 = int_to_ptr.vmem [resolvable:$true] %s293_s20 }
  0x1c   : > { %p1569_p8 = pnand %p1236_p6, %p42_p2  ;;  %s282_s21 = scalar_lea.sflag [#allocation3], %s281_s25 }
  0x1d   : > { %s1344_s4 = sshra.s32 %s292_s16, 4  ;;  %s1351_s9 = scalar_lea.hbm %s1797_s0, 16  ;;  %s1345_s4 = int_to_ptr.hbm [resolvable:$true] %s1344_s4 }
  0x1e   : > { %s1346_s22 = scalar_lea.hbm %s1345_s4, 8  ;;  %p1348_p9 = pneg %p1569_p8 }
  0x1f   : > { %p1347_p7 = scmp.ne.s32.totalorder %s1345_s4, %s1346_s22  ;;  %p1352_p0 = scmp.lt.s32.totalorder %s1345_s4, %s1797_s0 }
  0x20   : > { %p1353_p2 = scmp.lt.s32.totalorder %s1351_s9, %s1346_s22 }
  0x21   : > { %p1349_p10 = pnand %p1348_p9, %p1347_p7 }
  0x22   : > { %p1354_p6 = por %p1353_p2, %p1352_p0 }
  0x23   : > { %p1350_p11 = pneg %p1349_p10 }
  0x25   : > { %p1355_p5 = pnand %p1354_p6, %p1350_p11 }
  0x27   : > { %1358 = shalt.err (!%p1355_p5)
}
  0x28   : > { %1230 = dma.hbm_to_vmem [thread:$0]  (!%p1569_p8), %s292_s16, 128, %s294_s20, %s282_s21  }
  0x29   : > { %320 = sbr.rel (%p1524_p3) target bundleno = 1022 (0x3fe), region = 48  ;;  %s1586_s25 = sand.u32 (!%p1524_p3), 1, %s1436_s28  }
  0x2a   : > { %s1174_s17 = sshll.u32 (!%p1524_p3), %s1586_s25, 3  ;;  %s323_s10 = scalar_lea.sflag (!%p1524_p3), [#allocation3], %s1586_s25 }
  0x2b   : > { %s1592_s4 = scalar_lea.vmem (!%p1524_p3), [#allocation2], %s1174_s17 }
  0x2e   : > { %1419 = dma.done.wait (%p1551_p12), %s323_s10, 128  }
  0x2f   : > { %1421 = vsyncadd (%p1551_p12), %s323_s10, 4294967168 }
  0x30   : > { %1423 = dma.done.wait (%p47_p1), [#allocation6], 512  }
  0x31   : > { %1425 = vsyncadd (%p47_p1), [#allocation6], 4294966784  ;;  %s1603_s13 = sshll.u32 %s1519_s12, 3  ;;  %v415_v0 = vld [vmem:[#allocation5 + $0x18] sm:$0xff]  ;;  %v414_v1 = vld [vmem:[#allocation5 + $0x10] sm:$0xff]  ;;  %vm416_vm0 = vcmask 261120  }
  0x32   : > { %p380_p3 = scmp.lt.s32.totalorder %s1603_s13, 15  ;;  %453 = vmatpush.msra.mxu0 %v415_v0  ;;  %1203 = vmatpush.msra.mxu1 %v415_v0  ;;  %v413_v2 = vld [vmem:[#allocation5 + $0x8] sm:$0xff]  ;;  %v412_v3 = vld [vmem:[#allocation5] sm:$0xff]  ;;  %v483_v10 = vld [vmem:[%s1800_s3 + $0x8] sm:$0xff]  ;;  %vm607_vm1 = vcmask 1041409   ;;  %vm609_vm2 = vcmask 1042434   ;;  %s1031_s21 = scalar_lea.hbm %s1804_s7, %s1603_s13 }
  0x33   : > { %1205 = vmatpush.msra.mxu3 %v415_v0  ;;  %1204 = vmatpush.msra.mxu2 %v415_v0  ;;  %v485_v6 = vld [vmem:[%s1800_s3 + $0x18] sm:$0xff]  ;;  %v484_v8 = vld [vmem:[%s1800_s3 + $0x10] sm:$0xff]  ;;  %v482_v11 = vld [vmem:[%s1800_s3] sm:$0xff]  ;;  %vm611_vm3 = vcmask 1043459   ;;  %vm613_vm4 = vcmask 1044484   ;;  %vm615_vm5 = vcmask 1045509  }
  0x34   : > { %s1607_s22 = scalar_select %p380_p3, %s1603_s13, 15  ;;  %454 = vmatpush.msra.mxu0 %v414_v1  ;;  %1206 = vmatpush.msra.mxu1 %v414_v1  ;;  %v1639_v13 = vld [vmem:[%s1592_s4] sm:$0xff]  ;;  %vm617_vm6 = vcmask 1046534   ;;  %vm619_vm7 = vcmask 1047559   ;;  %vm622_vm8 = vcmask 64512  }
  0x35   : > { %1208 = vmatpush.msra.mxu3 %v414_v1  ;;  %1207 = vmatpush.msra.mxu2 %v414_v1  ;;  %v1278_v19 = vld [vmem:[%s1803_s6] ss:$0 sm:$0xff]  ;;  %p391_p1 = scmp.lt.s32.totalorder %s1519_s12, 1  ;;  %s372_s4 = scalar_lea.vmem [#allocation7], %s1174_s17 }
  0x36   : > { %s1178_s16 = sshll.u32 %s1607_s22, 3  ;;  %455 = vmatpush.msra.mxu0 %v413_v2  ;;  %1209 = vmatpush.msra.mxu1 %v413_v2  ;;  %v1279_v42 = vld [vmem:[%s1802_s5] ss:$0 sm:$0xff]  ;;  %s1035_s11 = sshll.u32 %s1031_s21, 4  ;;  %s1036_s11 = int_to_ptr.hbm [resolvable:$true] %s1035_s11 }
  0x37   : > { %s1615_s18 = scalar_lea.vmem %s1798_s1, %s1178_s16  ;;  %1211 = vmatpush.msra.mxu3 %v413_v2  ;;  %1210 = vmatpush.msra.mxu2 %v413_v2  ;;  %s1706_s15 = scalar_lea.vmem %s1799_s2, %s1178_s16 }
  0x38   : > { %v404_v4 = vld [vmem:[%s1615_s18] sm:$0xff]  ;;  %456 = vmatpush.msra.mxu0 %v412_v3  ;;  %1212 = vmatpush.msra.mxu1 %v412_v3  ;;  %v410_v7 = vld [vmem:[%s1615_s18 + $0x30] sm:$0xff]  ;;  %v409_v9 = vld [vmem:[%s1615_s18 + $0x28] sm:$0xff]  ;;  %s1821_s12 = smov (!%p391_p1, %s1519_s12), 1  ;;  %s1017_s13 = scalar_lea.sflag [#allocation4], %s1586_s25 }
  0x39   : > { %v408_v5 = vld [vmem:[%s1615_s18 + $0x20] sm:$0xff]  ;;  %1182 = vmatmul.msk.f32.vlgmr.msra.gmra.mxu0 %vm416_vm0, %v404_v4  ;;  %1214 = vmatpush.msra.mxu3 %v412_v3  ;;  %v405_v12 = vld [vmem:[%s1615_s18 + $0x8] sm:$0xff]  ;;  %v411_v14 = vld [vmem:[%s1615_s18 + $0x38] sm:$0xff]  ;;  %s1181_s22 = sshll.u32 %s1821_s12, 3  ;;  %s1388_s9 = sshra.s32 %s1036_s11, 4  ;;  %s1389_s9 = int_to_ptr.hbm [resolvable:$true] %s1388_s9 }
  0x3a   : > { %1186 = vmatmul.msk.f32.vlgmr.msra.gmra.mxu1 %vm416_vm0, %v408_v5  ;;  %1188 = vmatmul.msk.f32.vlgmr.msra.gmra.mxu3 %vm416_vm0, %v410_v7  ;;  %v406_v15 = vld [vmem:[%s1615_s18 + $0x10] sm:$0xff]  ;;  %v407_v16 = vld [vmem:[%s1615_s18 + $0x18] sm:$0xff]  ;;  %s394_s23 = scalar_lea.vmem %s1805_s8, %s1181_s22  ;;  %s1033_s18 = sshll.u32 %s372_s4, 4  ;;  %s1034_s18 = int_to_ptr.vmem [resolvable:$true] %s1033_s18 }
  0x3b   : > { %505 = vmatpush.msrb.mxu1 %v485_v6  ;;  %1213 = vmatpush.msra.mxu2 %v412_v3  ;;  %s1390_s17 = scalar_lea.hbm %s1389_s9, 8  ;;  %s1394_s22 = scalar_lea.hbm %s1804_s7, 16 }
  0x3c   : > { %1187 = vmatmul.msk.f32.vlgmr.msra.gmra.mxu2 %vm416_vm0, %v409_v9  ;;  %p1391_p5 = scmp.ne.s32.totalorder %s1389_s9, %s1390_s17  ;;  %p1395_p7 = scmp.lt.s32.totalorder %s1389_s9, %s1804_s7 }
  0x3d   : > { %506 = vmatpush.msrb.mxu1 %v484_v8  ;;  %p1396_p9 = scmp.lt.s32.totalorder %s1394_s22, %s1390_s17 }
  0x3e   : > { %p1392_p12 = pnand %p1391_p5, %p1555_p13 }
  0x3f   : > { %507 = vmatpush.msrb.mxu1 %v483_v10  ;;  %p1397_p10 = por %p1396_p9, %p1395_p7 }
  0x40   : > { %p1393_p8 = pneg %p1392_p12 }
  0x41   : > { %508 = vmatpush.msrb.mxu1 %v482_v11  ;;  %1183 = vmatmul.msk.f32.gmra.mxu0 %vm416_vm0, %v405_v12 }
  0x42   : > { %1190 = vmatmul.msk.f32.vlgmr.msrb.gmra.mxu1 %vm416_vm0, %v1639_v13  ;;  %1189 = vmatmul.msk.f32.gmra.mxu3 %vm416_vm0, %v411_v14  ;;  %v597_v14 = vlaneseq  ;;  %p1398_p11 = pnand %p1397_p10, %p1393_p8 }
  0x49   : > { %1184 = vmatmul.msk.f32.gmra.mxu0 %vm416_vm0, %v406_v15 }
  0x51   : > { %1185 = vmatmul.msk.f32.gmra.mxu0 %vm416_vm0, %v407_v16 }
  0xb6   : > { %v458_v17 = vpop.f32.mrf.mxu0 }
  0xb7   : > { %v470_v18 = vpop.f32.mrf.mxu1 }
  0xbd   : > { %v476_v28 = vpop.f32.mrf.mxu3 }
  0xbe   : > { %v461_v20 = vpop.f32.mrf.mxu0 }
  0xbf   : > { %v510_v21 = vpop.f32.mrf.mxu1  ;;  %v473_v38 = vpop.f32.mrf.mxu2 }
  0xc0   : > { %v511_v22 = vadd.f32 %v1278_v19, %v510_v21 }
  0xc2   : > { %v515_v23 = vrot.slane %v511_v22, 2  ;;  %v518_v24 = vrot.slane %v511_v22, 5  ;;  %v521_v25 = vperm.slane %v511_v22, 0  ;;  %v517_v26 = vrot.slane %v511_v22, 4 }
  0xc3   : > { %v514_v27 = vrot.slane %v511_v22, 1  ;;  %v519_v34 = vrot.slane %v511_v22, 6  ;;  %v520_v40 = vrot.slane %v511_v22, 7  ;;  %v516_v41 = vrot.slane %v511_v22, 3 }
  0xc4   : > { %v523_v29 = vperm.slane %v515_v23, 0  ;;  %v537_v30 = vadd.f32 %v521_v25, %v458_v17  ;;  %v525_v31 = vperm.slane %v517_v26, 0  ;;  %v526_v36 = vperm.slane %v518_v24, 0 }
  0xc5   : > { %v522_v32 = vperm.slane %v514_v27, 0  ;;  %v527_v44 = vperm.slane %v519_v34, 0  ;;  %v528_v46 = vperm.slane %v520_v40, 0  ;;  %v524_v47 = vperm.slane %v516_v41, 0  ;;  %v479_v48 = vpop.f32.mrf.mxu3 }
  0xc6   : > { %v464_v33 = vpop.f32.mrf.mxu0  ;;  %1280 = vtanh.f32 %v537_v30  ;;  %v541_v37 = vadd.f32 %v525_v31, %v470_v18  ;;  %v542_v43 = vadd.f32 %v526_v36, %v473_v38  ;;  %v1664_v17 = vand.u32 127, %v597_v14 }
  0xc7   : > { %v539_v35 = vadd.f32 %v523_v29, %v464_v33  ;;  %v538_v39 = vadd.f32 %v522_v32, %v461_v20  ;;  %v543_v53 = vadd.f32 %v527_v44, %v476_v28  ;;  %v544_v57 = vadd.f32 %v528_v46, %v479_v48 }
  0xc9   : > { %1282 = vtanh.f32 %v539_v35 }
  0xca   : > { %1284 = vtanh.f32 %v541_v37 }
  0xcb   : > { %1286 = vtanh.f32 %v538_v39  ;;  %v1449_v39 = vmov 0  }
  0xcc   : > { %v1281_v45 = vpop.eup %1280  ;;  %1288 = vtanh.f32 %v542_v43  ;;  %1277 = vset.pattern.permute.xlu2 %v1449_v39  ;;  %1276 = vset.pattern.permute.xlu1 %v1449_v39 }
  0xcd   : > { %v557_v50 = vmul.f32 %v1281_v45, %v1279_v42  ;;  %1275 = vset.pattern.permute.xlu0 %v1449_v39 }
  0xce   : > { %v467_v49 = vpop.f32.mrf.mxu0 }
  0xcf   : > { %v1283_v51 = vpop.eup %1282  ;;  %v540_v52 = vadd.f32 %v524_v47, %v467_v49  ;;  %v565_v54 = vsel %vm416_vm0, %v557_v50, 0.0 }
  0xd0   : > { %v559_v55 = vmul.f32 %v1283_v51, %v1279_v42  ;;  %v1285_v56 = vpop.eup %1284  ;;  %566 = vadd.xlane.f32.xlu0 %v565_v54 }
  0xd1   : > { %1290 = vtanh.f32 %v540_v52  ;;  %v1287_v58 = vpop.eup %1286  ;;  %v561_v59 = vmul.f32 %v1285_v56, %v1279_v42 }
  0xd2   : > { %v571_v60 = vsel %vm416_vm0, %v559_v55, 0.0  ;;  %1292 = vtanh.f32 %v543_v53  ;;  %v558_v62 = vmul.f32 %v1287_v58, %v1279_v42  ;;  %v1289_v63 = vpop.eup %1288 }
  0xd3   : > { %572 = vadd.xlane.f32.xlu1 %v571_v60  ;;  %v577_v61 = vsel %vm416_vm0, %v561_v59, 0.0  ;;  %1294 = vtanh.f32 %v544_v57  ;;  %v562_v2 = vmul.f32 %v1289_v63, %v1279_v42 }
  0xd4   : > { %578 = vadd.xlane.f32.xlu2 %v577_v61  ;;  %v568_v1 = vsel %vm416_vm0, %v558_v62, 0.0 }
  0xd5   : > { %v580_v7 = vsel %vm416_vm0, %v562_v2, 0.0 }
  0xd7   : > { %v1291_v0 = vpop.eup %1290 }
  0xd8   : > { %v560_v3 = vmul.f32 %v1291_v0, %v1279_v42  ;;  %v1293_v4 = vpop.eup %1292  ;;  %569 = vadd.xlane.f32.xlu0 %v568_v1 }
  0xd9   : > { %v1295_v6 = vpop.eup %1294  ;;  %v563_v8 = vmul.f32 %v1293_v4, %v1279_v42 }
  0xda   : > { %v574_v5 = vsel %vm416_vm0, %v560_v3, 0.0  ;;  %v564_v9 = vmul.f32 %v1295_v6, %v1279_v42 }
  0xdb   : > { %575 = vadd.xlane.f32.xlu1 %v574_v5  ;;  %v583_v10 = vsel %vm416_vm0, %v563_v8, 0.0 }
  0xdc   : > { %581 = vadd.xlane.f32.xlu2 %v580_v7  ;;  %v586_v11 = vsel %vm416_vm0, %v564_v9, 0.0 }
  0xe0   : > { %584 = vadd.xlane.f32.xlu0 %v583_v10 }
  0xe3   : > { %587 = vadd.xlane.f32.xlu1 %v586_v11 }
 0x143   : > { %v567_v12 = vpop.xlane.xlu0 %566 }
 0x144   : > { %v599_v19 = vperm.slane %v567_v12, %v1664_v17 }
 0x146   : > { %v573_v15 = vpop.xlane.xlu1 %572 }
 0x147   : > { %v579_v16 = vpop.xlane.xlu2 %578  ;;  %v601_v21 = vperm.slane %v573_v15, %v1664_v17 }
 0x148   : > { %v603_v25 = vperm.slane %v579_v16, %v1664_v17 }
 0x14b   : > { %v570_v18 = vpop.xlane.xlu0 %569 }
 0x14c   : > { %v600_v20 = vperm.slane %v570_v18, %v1664_v17 }
 0x14e   : > { %v576_v22 = vpop.xlane.xlu1 %575  ;;  %v608_v23 = vsel %vm607_vm1, %v600_v20, %v599_v19 }
 0x14f   : > { %v602_v24 = vperm.slane %v576_v22, %v1664_v17  ;;  %v582_v26 = vpop.xlane.xlu2 %581  ;;  %v610_v27 = vsel %vm609_vm2, %v601_v21, %v608_v23 }
 0x150   : > { %v604_v30 = vperm.slane %v582_v26, %v1664_v17 }
 0x151   : > { %v612_v28 = vsel %vm611_vm3, %v602_v24, %v610_v27 }
 0x152   : > { %v614_v29 = vsel %vm613_vm4, %v603_v25, %v612_v28 }
 0x153   : > { %v585_v31 = vpop.xlane.xlu0 %584  ;;  %v616_v33 = vsel %vm615_vm5, %v604_v30, %v614_v29 }
 0x154   : > { %v605_v32 = vperm.slane %v585_v31, %v1664_v17 }
 0x156   : > { %v588_v34 = vpop.xlane.xlu1 %587  ;;  %v618_v36 = vsel %vm617_vm6, %v605_v32, %v616_v33 }
 0x157   : > { %v606_v35 = vperm.slane %v588_v34, %v1664_v17 }
 0x159   : > { %v620_v37 = vsel %vm619_vm7, %v606_v35, %v618_v36  ;;  %v397_v36 = vld [vmem:[%s1706_s15 + $0x8] sm:$0xff] }
 0x15a   : > { %v623_v38 = vsel %vm622_vm8, %v620_v37, -inf  ;;  %793 = vmatpush.msrb.mxu3 %v397_v36 }
 0x15b   : > { %624 = vmax.xlane.f32.xlu2 %v623_v38 }
 0x1ce   : > { %v625_v40 = vpop.xlane.xlu2 %624 }
 0x1cf   : > { %v629_v41 = vperm.slane %v625_v40, 2  ;;  %v628_v42 = vperm.slane %v625_v40, 1  ;;  %v627_v43 = vperm.slane %v625_v40, 0  ;;  %v630_v47 = vperm.slane %v625_v40, 3 }
 0x1d0   : > { %v631_v48 = vperm.slane %v625_v40, 4  ;;  %v634_v49 = vperm.slane %v625_v40, 7  ;;  %v632_v57 = vperm.slane %v625_v40, 5  ;;  %v633_v59 = vperm.slane %v625_v40, 6 }
 0x1d1   : > { %v645_v44 = vsub.f32 %v573_v15, %v629_v41  ;;  %v644_v45 = vsub.f32 %v570_v18, %v628_v42  ;;  %v643_v46 = vsub.f32 %v567_v12, %v627_v43  ;;  %v646_v53 = vsub.f32 %v576_v22, %v630_v47 }
 0x1d2   : > { %v647_v54 = vsub.f32 %v579_v16, %v631_v48  ;;  %v650_v55 = vsub.f32 %v588_v34, %v634_v49  ;;  %v648_v0 = vsub.f32 %v582_v26, %v632_v57  ;;  %v649_v1 = vsub.f32 %v585_v31, %v633_v59  ;;  %v400_v57 = vld [vmem:[%s1706_s15 + $0x20] sm:$0xff] }
 0x1d3   : > { %v655_v50 = vmul.f32 1.442695, %v645_v44  ;;  %v653_v51 = vmul.f32 1.442695, %v644_v45  ;;  %v651_v52 = vmul.f32 1.442695, %v643_v46  ;;  %874 = vmatpush.msra.mxu1 %v400_v57 }
 0x1d4   : > { %v657_v56 = vmul.f32 1.442695, %v646_v53  ;;  %v659_v58 = vmul.f32 1.442695, %v647_v54  ;;  %v665_v61 = vmul.f32 1.442695, %v650_v55 }
 0x1d5   : > { %1296 = vpow2.f32 %v655_v50  ;;  %v661_v2 = vmul.f32 1.442695, %v648_v0  ;;  %v663_v3 = vmul.f32 1.442695, %v649_v1  ;;  %v396_v54 = vld [vmem:[%s1706_s15] sm:$0xff]  ;;  %v398_v55 = vld [vmem:[%s1706_s15 + $0x10] sm:$0xff] }
 0x1d6   : > { %1298 = vpow2.f32 %v653_v51  ;;  %766 = vmatpush.msrb.mxu2 %v396_v54  ;;  %v402_v0 = vld [vmem:[%s1706_s15 + $0x30] sm:$0xff] }
 0x1d7   : > { %1300 = vpow2.f32 %v651_v52 }
 0x1d8   : > { %1302 = vpow2.f32 %v657_v56  ;;  %v399_v56 = vld [vmem:[%s1706_s15 + $0x18] sm:$0xff]  ;;  %820 = vmatpush.msra.mxu2 %v398_v55 }
 0x1d9   : > { %1304 = vpow2.f32 %v659_v58  ;;  %847 = vmatpush.msra.mxu3 %v399_v56  ;;  %v403_v58 = vld [vmem:[%s1706_s15 + $0x38] sm:$0xff] }
 0x1da   : > { %1306 = vpow2.f32 %v665_v61  ;;  %955 = vmatpush.msrb.mxu1 %v403_v58 }
 0x1db   : > { %v1682_v60 = vpop.eup %1296  ;;  %1308 = vpow2.f32 %v661_v2 }
 0x1dc   : > { %v1299_v62 = vpop.eup %1298  ;;  %682 = vperm.xlu2 %1277, %v1682_v60   ;;  %1310 = vpow2.f32 %v663_v3 }
 0x1dd   : > { %v1301_v63 = vpop.eup %1300  ;;  %679 = vperm.xlu1 %1276, %v1299_v62  }
 0x1de   : > { %676 = vperm.xlu0 %1275, %v1301_v63   ;;  %v1303_v4 = vpop.eup %1302 }
 0x1df   : > { %v1305_v5 = vpop.eup %1304 }
 0x1e0   : > { %v1307_v6 = vpop.eup %1306 }
 0x1e1   : > { %v1309_v7 = vpop.eup %1308 }
 0x1e2   : > { %v1311_v8 = vpop.eup %1310 }
 0x1e4   : > { %685 = vperm.xlu2 %1277, %v1303_v4  }
 0x1e5   : > { %688 = vperm.xlu1 %1276, %v1305_v5  }
 0x1e6   : > { %697 = vperm.xlu0 %1275, %v1307_v6  }
 0x1ec   : > { %691 = vperm.xlu2 %1277, %v1309_v7  }
 0x1ed   : > { %694 = vperm.xlu1 %1276, %v1311_v8  }
 0x236   : > { %v683_v9 = vpop.permute.xlu2 %682 }
 0x237   : > { %v701_v19 = vperm.slane %v683_v9, %v1664_v17 }
 0x23e   : > { %v686_v12 = vpop.permute.xlu2 %685 }
 0x23f   : > { %v702_v22 = vperm.slane %v686_v12, %v1664_v17 }
 0x246   : > { %v692_v23 = vpop.permute.xlu2 %691 }
 0x247   : > { %v704_v27 = vperm.slane %v692_v23, %v1664_v17 }
 0x24f   : > { %v680_v10 = vpop.permute.xlu1 %679 }
 0x250   : > { %v677_v11 = vpop.permute.xlu0 %676  ;;  %v700_v14 = vperm.slane %v680_v10, %v1664_v17 }
 0x251   : > { %v699_v15 = vperm.slane %v677_v11, %v1664_v17 }
 0x253   : > { %v707_v16 = vsel %vm607_vm1, %v700_v14, %v699_v15 }
 0x254   : > { %v708_v20 = vsel %vm609_vm2, %v701_v19, %v707_v16 }
 0x255   : > { %v709_v24 = vsel %vm611_vm3, %v702_v22, %v708_v20 }
 0x257   : > { %v689_v18 = vpop.permute.xlu1 %688 }
 0x258   : > { %v703_v21 = vperm.slane %v689_v18, %v1664_v17  ;;  %v698_v26 = vpop.permute.xlu0 %697 }
 0x259   : > { %v706_v30 = vperm.slane %v698_v26, %v1664_v17 }
 0x25a   : > { %v710_v25 = vsel %vm613_vm4, %v703_v21, %v709_v24 }
 0x25b   : > { %v711_v31 = vsel %vm615_vm5, %v704_v27, %v710_v25  ;;  %v961_v25 = vrot.slane %v1639_v13, 2 }
 0x25f   : > { %v695_v28 = vpop.permute.xlu1 %694 }
 0x260   : > { %v705_v29 = vperm.slane %v695_v28, %v1664_v17  ;;  %v962_v28 = vrot.slane %v1639_v13, 3 }
 0x262   : > { %v712_v32 = vsel %vm617_vm6, %v705_v29, %v711_v31  ;;  %v963_v31 = vrot.slane %v1639_v13, 4 }
 0x263   : > { %v713_v33 = vsel %vm619_vm7, %v706_v30, %v712_v32 }
 0x264   : > { %v715_v34 = vsel %vm622_vm8, %v713_v33, 0.0 }
 0x265   : > { %716 = vadd.xlane.f32.xlu2 %v715_v34  ;;  %v964_v34 = vrot.slane %v1639_v13, 5 }
 0x2d8   : > { %v717_v35 = vpop.xlane.xlu2 %716 }
 0x2d9   : > { %1312 = vrcp.f32 %v717_v35 }
 0x2df   : > { %v1313_v37 = vpop.eup %1312 }
 0x2e0   : > { %v721_v38 = vperm.slane %v1313_v37, 1  ;;  %v720_v39 = vperm.slane %v1313_v37, 0  ;;  %v723_v42 = vperm.slane %v1313_v37, 3  ;;  %v722_v43 = vperm.slane %v1313_v37, 2 }
 0x2e1   : > { %v725_v46 = vperm.slane %v1313_v37, 5  ;;  %v724_v47 = vperm.slane %v1313_v37, 4  ;;  %v727_v50 = vperm.slane %v1313_v37, 7  ;;  %v726_v51 = vperm.slane %v1313_v37, 6 }
 0x2e2   : > { %v737_v40 = vmul.f32 %v1299_v62, %v721_v38  ;;  %v736_v41 = vmul.f32 %v1301_v63, %v720_v39  ;;  %v739_v44 = vmul.f32 %v1303_v4, %v723_v42  ;;  %v738_v45 = vmul.f32 %v1682_v60, %v722_v43  ;;  %v401_v63 = vld [vmem:[%s1706_s15 + $0x28] sm:$0xff] }
 0x2e3   : > { %v741_v48 = vmul.f32 %v1309_v7, %v725_v46  ;;  %v740_v49 = vmul.f32 %v1305_v5, %v724_v47  ;;  %v743_v52 = vmul.f32 %v1307_v6, %v727_v50  ;;  %v742_v53 = vmul.f32 %v1311_v8, %v726_v51 }
 0x2e4   : > { %773 = vperm.xlu0 %1275, %v737_v40   ;;  %746 = vperm.xlu1 %1276, %v736_v41   ;;  %v966_v42 = vrot.slane %v1639_v13, 7 }
 0x2ec   : > { %827 = vperm.xlu0 %1275, %v739_v44   ;;  %800 = vperm.xlu1 %1276, %v738_v45   ;;  %v965_v45 = vrot.slane %v1639_v13, 6 }
 0x2f4   : > { %881 = vperm.xlu0 %1275, %v741_v48   ;;  %854 = vperm.xlu1 %1276, %v740_v49  }
 0x2fc   : > { %935 = vperm.xlu0 %1275, %v743_v52   ;;  %908 = vperm.xlu1 %1276, %v742_v53  }
 0x356   : > { %v774_v59 = vpop.permute.xlu0 %773  ;;  %v747_v60 = vpop.permute.xlu1 %746 }
 0x357   : > { %v775_v61 = vperm.slane %v774_v59, %v1664_v17  ;;  %v748_v62 = vperm.slane %v747_v60, %v1664_v17 }
 0x359   : > { %1191 = vmatmul.msk.f32.vlgmr.msrb.gmra.mxu2 %vm622_vm8, %v748_v62  ;;  %1192 = vmatmul.msk.f32.vlgmr.msrb.gmra.mxu3 %vm622_vm8, %v775_v61  ;;  %v1007_v9 = vsel %vm607_vm1, %v775_v61, %v748_v62 }
 0x35a   : > { %901 = vmatpush.msrb.mxu2 %v401_v63  ;;  %928 = vmatpush.msrb.mxu3 %v402_v0 }
 0x35e   : > { %v828_v1 = vpop.permute.xlu0 %827  ;;  %v801_v2 = vpop.permute.xlu1 %800 }
 0x35f   : > { %v829_v3 = vperm.slane %v828_v1, %v1664_v17  ;;  %v802_v4 = vperm.slane %v801_v2, %v1664_v17 }
 0x361   : > { %1193 = vmatmul.msk.f32.vlgmr.msra.gmra.mxu2 %vm622_vm8, %v802_v4  ;;  %1194 = vmatmul.msk.f32.vlgmr.msra.gmra.mxu3 %vm622_vm8, %v829_v3  ;;  %v1008_v10 = vsel %vm609_vm2, %v802_v4, %v1007_v9 }
 0x362   : > { %v1009_v11 = vsel %vm611_vm3, %v829_v3, %v1008_v10 }
 0x366   : > { %v882_v5 = vpop.permute.xlu0 %881  ;;  %v855_v6 = vpop.permute.xlu1 %854 }
 0x367   : > { %v883_v7 = vperm.slane %v882_v5, %v1664_v17  ;;  %v856_v8 = vperm.slane %v855_v6, %v1664_v17 }
 0x369   : > { %1195 = vmatmul.msk.f32.vlgmr.msra.gmra.mxu1 %vm622_vm8, %v856_v8  ;;  %1196 = vmatmul.msk.f32.vlgmr.msrb.gmra.mxu2 %vm622_vm8, %v883_v7  ;;  %v1010_v12 = vsel %vm613_vm4, %v856_v8, %v1009_v11 }
 0x36a   : > { %v1011_v19 = vsel %vm615_vm5, %v883_v7, %v1010_v12 }
 0x36e   : > { %v936_v14 = vpop.permute.xlu0 %935  ;;  %v909_v15 = vpop.permute.xlu1 %908 }
 0x36f   : > { %v937_v16 = vperm.slane %v936_v14, %v1664_v17  ;;  %v910_v18 = vperm.slane %v909_v15, %v1664_v17  ;;  %v960_v17 = vrot.slane %v1639_v13, 1 }
 0x371   : > { %v1012_v20 = vsel %vm617_vm6, %v910_v18, %v1011_v19  ;;  %1197 = vmatmul.msk.f32.vlgmr.msrb.gmra.mxu3 %vm622_vm8, %v910_v18  ;;  %1198 = vmatmul.msk.f32.vlgmr.msrb.gmra.mxu1 %vm622_vm8, %v937_v16 }
 0x372   : > { %v1013_v21 = vsel %vm619_vm7, %v937_v16, %v1012_v20 }
 0x373   : > { %1015 = vst.msk [vmem:[%s394_s23] sm:$0xff] %vm622_vm8, %v1013_v21 }
 0x3dc   : > { %v768_v22 = vpop.f32.mrf.mxu2  ;;  %v795_v23 = vpop.f32.mrf.mxu3 }
 0x3dd   : > { %v976_v27 = vadd.f32 %v960_v17, %v795_v23  ;;  %v975_v37 = vadd.f32 %v768_v22, %v1639_v13 }
 0x3df   : > { %v991_v32 = vrot.slane %v976_v27, 7 }
 0x3e1   : > { %v992_v39 = vsel %vm607_vm1, %v991_v32, %v975_v37 }
 0x3e4   : > { %v822_v24 = vpop.f32.mrf.mxu2  ;;  %v849_v30 = vpop.f32.mrf.mxu3 }
 0x3e5   : > { %v977_v29 = vadd.f32 %v961_v25, %v822_v24  ;;  %v978_v33 = vadd.f32 %v962_v28, %v849_v30 }
 0x3e6   : > { %v876_v26 = vpop.f32.mrf.mxu1 }
 0x3e7   : > { %v993_v35 = vrot.slane %v977_v29, 6  ;;  %v979_v38 = vadd.f32 %v963_v31, %v876_v26  ;;  %v995_v40 = vrot.slane %v978_v33, 5 }
 0x3e9   : > { %v994_v43 = vsel %vm609_vm2, %v993_v35, %v992_v39  ;;  %v997_v46 = vrot.slane %v979_v38, 4 }
 0x3ea   : > { %v996_v47 = vsel %vm611_vm3, %v995_v40, %v994_v43 }
 0x3eb   : > { %v998_v52 = vsel %vm613_vm4, %v997_v46, %v996_v47 }
 0x3ec   : > { %v903_v36 = vpop.f32.mrf.mxu2 }
 0x3ed   : > { %v980_v41 = vadd.f32 %v964_v34, %v903_v36 }
 0x3ee   : > { %v957_v44 = vpop.f32.mrf.mxu1 }
 0x3ef   : > { %v999_v48 = vrot.slane %v980_v41, 3  ;;  %v982_v49 = vadd.f32 %v966_v42, %v957_v44 }
 0x3f1   : > { %v1000_v53 = vsel %vm615_vm5, %v999_v48, %v998_v52  ;;  %v1003_v54 = vrot.slane %v982_v49, 1 }
 0x3f4   : > { %v930_v50 = vpop.f32.mrf.mxu3 }
 0x3f5   : > { %v981_v51 = vadd.f32 %v965_v45, %v930_v50 }
 0x3f7   : > { %v1001_v13 = vrot.slane %v981_v51, 2 }
 0x3f9   : > { %v1002_v55 = vsel %vm617_vm6, %v1001_v13, %v1000_v53 }
 0x3fa   : > { %v1004_v56 = vsel %vm619_vm7, %v1003_v54, %v1002_v55 }
 0x3fb   : > { %1006 = vst.msk [vmem:[%s372_s4] sm:$0xff] %vm416_vm0, %v1004_v56 }
 0x3fc   : > { %1401 = shalt.err (!%p1398_p11)
}
 0x3fd   : > { %1221 = dma.vmem_to_hbm [thread:$0]  (%p1555_p13), %s1034_s18, 128, %s1036_s11, %s1017_s13  }
 0x3fe PF: > { %s1050_s25 = sand.u32 1, %s1432_s27   ;;  %p1814_p0 = scmp.ge.s32.totalorder %s1444_s30, 2 }
 0x3ff   : > { %s1051_s23 = scalar_lea.sflag [#allocation4], %s1050_s25 }
 0x400   : > { %p1232_p2 = pnand %p1814_p0, %p1560_p4 }
 0x402   : > { %p1233_p6 = pneg %p1232_p2 }
 0x404   : > { %1427 = dma.done.wait (%p1233_p6), %s1051_s23, 128  }
 0x405   : > { %1429 = vsyncadd (%p1233_p6), %s1051_s23, 4294967168  ;;  %s1815_s12 = sld [smem:[#allocation11_spill]]  ;;  %p23_p3 = scmp.ge.s32.totalorder %s1535_s19, 4  }
 0x406   : > { %s1816_s27 = smov %s1436_s28  ;;  %s1817_s28 = smov %s1440_s29 }
 0x407   : > { %s1819_s30 = smov %s1535_s19  ;;  %25 = sbr.rel (!%p23_p3) target bundleno = 8 (0x8), region = 115 }
 0x40b   : > { %s1818_s29 = smov %s1815_s12 }
 0x40c   :  { %1064 = vsyncpa [#allocation3], 1 }
 0x40d   :  { %1066 = vsyncpa [#allocation3 + $0x1], 1 }
 0x40e   :  { %1067 = vsyncpa [#allocation6], 1 }
 0x40f   :  { %1068 = vsyncpa [#allocation4], 1 }
 0x410   :  { %1070 = vsyncpa [#allocation4 + $0x1], 1 }

</bundles_post_ra>
